<compile_context>
chip_gen: v5e
topology: v5e:2x2
jax: 0.10.0
libtpu: 0.0.40
codegen_flags: <defaults>
</compile_context>

<pallas_src>
import jax
import jax.numpy as jnp
from jax.experimental import pallas as pl
from jax.experimental.pallas import tpu as pltpu


def _round_up(n: int, m: int) -> int:
    return ((n + m - 1) // m) * m


def _vmem_capacity_bytes(default: int = 64 * 1024 * 1024) -> int:
    """Physical VMEM of the current chip, with a conservative fallback."""
    try:
        info = pltpu.get_tpu_info()
        cap = getattr(info, "vmem_capacity_bytes", None)
        if cap:
            return int(cap)
    except Exception:
        pass
    return default


def residual_unit_kernel(x_ref, w1_ref, b1_ref, w2_ref, b2_ref, o_ref):
    x = x_ref[...]                                   # (bt, D), input dtype
    x_bf16 = x.astype(jnp.bfloat16)

    # fc1 + relu : (bt, D) @ (D, Dp) -> (bt, Dp), f32 accumulate on the MXU.
    h = jnp.dot(x_bf16, w1_ref[...], preferred_element_type=jnp.float32)
    h = jnp.maximum(h + b1_ref[...], 0.0)

    # fc2 : (bt, Dp) @ (Dp, D) -> (bt, D).
    y = jnp.dot(h.astype(jnp.bfloat16), w2_ref[...],
                preferred_element_type=jnp.float32)

    # Residual add + relu in f32 (x_f32 materialized only here — short live range).
    x_f32 = x if x.dtype == jnp.float32 else x.astype(jnp.float32)
    y = jnp.maximum(y + b2_ref[...] + x_f32, 0.0)

    o_ref[...] = y.astype(o_ref.dtype)


def prepare_residual_unit_params(w1, b1, w2, b2):
    """One-time parameter prep.

    w1, w2: [out, in] (PyTorch nn.Linear layout); b1, b2: [D].
    Returns W1t [D, Dp] bf16, b1 [1, Dp] f32, W2t [Dp, D] bf16, b2 [1, D] f32,
    where Dp = round_up(D, 128).  Only the *hidden* dim is padded; padded h
    columns are relu(0)=0 and multiply zero rows of W2t, so results are exact.
    """
    D = w1.shape[0]
    Dp = _round_up(D, 128)

    w1t = jnp.asarray(w1, jnp.float32).T                         # [in=D, out=D]
    w1t = jnp.pad(w1t, ((0, 0), (0, Dp - D))).astype(jnp.bfloat16)   # [D, Dp]
    b1p = jnp.pad(jnp.asarray(b1, jnp.float32), (0, Dp - D)).reshape(1, Dp)

    w2t = jnp.asarray(w2, jnp.float32).T                         # [in=D, out=D]
    w2t = jnp.pad(w2t, ((0, Dp - D), (0, 0))).astype(jnp.bfloat16)   # [Dp, D]
    b2p = jnp.asarray(b2, jnp.float32).reshape(1, D)

    return w1t, b1p, w2t, b2p


def residual_unit(x, w1_p, b1_p, w2_p, b2_p, *, batch_tile=None):
    """x: [B, D].  w*_p / b*_p: outputs of prepare_residual_unit_params."""
    B, D = x.shape
    Din, Dp = w1_p.shape
    assert Din == D, (Din, D)
    assert w2_p.shape == (Dp, D)
    assert b1_p.shape == (1, Dp) and b2_p.shape == (1, D)

    # Batch tile: multiple of 8 (f32 sublane), large cap to amortize per-step
    # overhead and keep DMA bursts long; ragged last block handled by Pallas.
    if batch_tile is None:
        batch_tile = min(1024, _round_up(B, 8))
    batch_tile = max(8, _round_up(batch_tile, 8))
    grid = (pl.cdiv(B, batch_tile),)

    out_dtype = x.dtype
    x_bytes = jnp.dtype(x.dtype).itemsize
    o_bytes = jnp.dtype(out_dtype).itemsize

    # Advisory cost estimate (real, unpadded activation traffic).
    cost = pl.CostEstimate(
        flops=4 * B * D * Dp,                        # two matmuls
        transcendentals=0,
        bytes_accessed=B * D * (x_bytes + o_bytes)   # x in + out
        + 2 * D * Dp * 2                             # two bf16 weights
        + (Dp + D) * 4,                              # two f32 biases
    )

    # VMEM budget: x/out tiles double-buffered, weights/biases single-buffered,
    # plus internal h / y / x_f32 intermediates.  Clamp to physical VMEM - 15%.
    need = (2 * batch_tile * D * (x_bytes + o_bytes)     # x + out, double-buffered
            + 2 * D * Dp * 2 + (Dp + D) * 4              # weights + biases (x1)
            + batch_tile * Dp * (4 + 2)                  # h (f32) + h (bf16)
            + 2 * batch_tile * D * 4)                    # y + x_f32
    vmem_cap = _vmem_capacity_bytes()
    vmem_limit = int(min(max(2 * need, 32 * 1024 * 1024),
                         int(0.85 * vmem_cap)))

    out = pl.pallas_call(
        residual_unit_kernel,
        out_shape=jax.ShapeDtypeStruct((B, D), out_dtype),
        grid_spec=pltpu.PrefetchScalarGridSpec(
            num_scalar_prefetch=0,
            grid=grid,
            in_specs=[
                pl.BlockSpec((batch_tile, D), lambda i: (i, 0)),     # x tile
                pl.BlockSpec((D, Dp), lambda i: (0, 0),
                             pipeline_mode=pl.Buffered(1)),          # W1 resident
                pl.BlockSpec((1, Dp), lambda i: (0, 0),
                             pipeline_mode=pl.Buffered(1)),          # b1
                pl.BlockSpec((Dp, D), lambda i: (0, 0),
                             pipeline_mode=pl.Buffered(1)),          # W2 resident
                pl.BlockSpec((1, D), lambda i: (0, 0),
                             pipeline_mode=pl.Buffered(1)),          # b2
            ],
            out_specs=pl.BlockSpec((batch_tile, D), lambda i: (i, 0)),
        ),
        compiler_params=pltpu.CompilerParams(
            dimension_semantics=("parallel",),
            vmem_limit_bytes=vmem_limit,
        ),
        cost_estimate=cost,
    )(x, w1_p, b1_p, w2_p, b2_p)

    return out


def _torch_linear_init(key, out_features, in_features):
    """Deterministic init mimicking nn.Linear default (uniform +-1/sqrt(in))."""
    kw, kb = jax.random.split(key)
    bound = 1.0 / jnp.sqrt(jnp.float32(in_features))
    w = jax.random.uniform(kw, (out_features, in_features), jnp.float32,
                           minval=-bound, maxval=bound)
    b = jax.random.uniform(kb, (out_features,), jnp.float32,
                           minval=-bound, maxval=bound)
    return w, b


if __name__ == "__main__":
    key = jax.random.PRNGKey(0)
    k_x, k_fc1, k_fc2 = jax.random.split(key, 3)

    batch_size = 8
    input_size = 32   # num_fields * embed_dims

    x = jax.random.normal(k_x, (batch_size, input_size), jnp.float32)
    w1, b1 = _torch_linear_init(k_fc1, input_size, input_size)
    w2, b2 = _torch_linear_init(k_fc2, input_size, input_size)

    # One-time parameter preparation (transpose + pad hidden dim + bf16 cast).
    params = prepare_residual_unit_params(w1, b1, w2, b2)

    out = residual_unit(x, *params)
    out = jax.block_until_ready(out)

    # Pure-JAX f32 reference (looser tolerance: bf16 matmul operands).
    h_ref = jnp.maximum(x @ w1.T + b1, 0.0)
    y_ref = jnp.maximum(h_ref @ w2.T + b2 + x, 0.0)
    assert out.shape == (batch_size, input_size)
    assert jnp.allclose(out, y_ref, atol=5e-2, rtol=5e-2), (
        float(jnp.max(jnp.abs(out - y_ref))))

    print("KERNEL_OK")
</pallas_src>

<mosaic_0001>
module attributes {stable_mosaic.version = 11 : i64} {
  func.func @residual_unit_kernel(%arg0: i32, %arg1: memref<8x32xf32, #tpu.memory_space<vmem>>, %arg2: memref<32x128xbf16, #tpu.memory_space<vmem>>, %arg3: memref<1x128xf32, #tpu.memory_space<vmem>>, %arg4: memref<128x32xbf16, #tpu.memory_space<vmem>>, %arg5: memref<1x32xf32, #tpu.memory_space<vmem>>, %arg6: memref<8x32xf32, #tpu.memory_space<vmem>>) attributes {dimension_semantics = [#tpu.dimension_semantics<parallel>], iteration_bounds = array<i64: 1>, scalar_prefetch = 0 : i64, scratch_operands = 0 : i64, tpu.core_type = #tpu.core_type<tc>, window_params = [{transform_indices = @transform_0, window_bounds = array<i64: 8, 32>}, {pipeline_mode = #tpu.pipeline_mode<synchronous>, transform_indices = @transform_1, window_bounds = array<i64: 32, 128>}, {pipeline_mode = #tpu.pipeline_mode<synchronous>, transform_indices = @transform_2, window_bounds = array<i64: 1, 128>}, {pipeline_mode = #tpu.pipeline_mode<synchronous>, transform_indices = @transform_3, window_bounds = array<i64: 128, 32>}, {pipeline_mode = #tpu.pipeline_mode<synchronous>, transform_indices = @transform_4, window_bounds = array<i64: 1, 32>}, {transform_indices = @transform_5, window_bounds = array<i64: 8, 32>}]} {
    %c0 = arith.constant 0 : index
    %c0_0 = arith.constant 0 : index
    %0 = vector.load %arg1[%c0, %c0_0] : memref<8x32xf32, #tpu.memory_space<vmem>>, vector<8x32xf32>
    %1 = arith.truncf %0 : vector<8x32xf32> to vector<8x32xbf16>
    %c0_1 = arith.constant 0 : index
    %c0_2 = arith.constant 0 : index
    %2 = vector.load %arg2[%c0_1, %c0_2] : memref<32x128xbf16, #tpu.memory_space<vmem>>, vector<32x128xbf16>
    %cst = arith.constant dense<0.000000e+00> : vector<8x128xf32>
    %3 = tpu.matmul %1, %2, %cst {dimension_numbers = #tpu.dot_dimension_numbers<[1], [0], [0], [1], [0, 0, 1, 1], [], []>} : vector<8x32xbf16>, vector<32x128xbf16>, vector<8x128xf32> -> vector<8x128xf32>
    %c0_3 = arith.constant 0 : index
    %c0_4 = arith.constant 0 : index
    %4 = vector.load %arg3[%c0_3, %c0_4] : memref<1x128xf32, #tpu.memory_space<vmem>>, vector<1x128xf32>
    %5 = vector.broadcast %4 : vector<1x128xf32> to vector<8x128xf32>
    %6 = arith.addf %3, %5 : vector<8x128xf32>
    %cst_5 = arith.constant 0.000000e+00 : f32
    %7 = vector.broadcast %cst_5 : f32 to vector<8x128xf32>
    %8 = arith.maximumf %6, %7 : vector<8x128xf32>
    %9 = arith.truncf %8 : vector<8x128xf32> to vector<8x128xbf16>
    %c0_6 = arith.constant 0 : index
    %c0_7 = arith.constant 0 : index
    %10 = vector.load %arg4[%c0_6, %c0_7] : memref<128x32xbf16, #tpu.memory_space<vmem>>, vector<128x32xbf16>
    %cst_8 = arith.constant dense<0.000000e+00> : vector<8x32xf32>
    %11 = tpu.matmul %9, %10, %cst_8 {dimension_numbers = #tpu.dot_dimension_numbers<[1], [0], [0], [1], [0, 0, 1, 1], [], []>} : vector<8x128xbf16>, vector<128x32xbf16>, vector<8x32xf32> -> vector<8x32xf32>
    %c0_9 = arith.constant 0 : index
    %c0_10 = arith.constant 0 : index
    %12 = vector.load %arg5[%c0_9, %c0_10] : memref<1x32xf32, #tpu.memory_space<vmem>>, vector<1x32xf32>
    %13 = vector.broadcast %12 : vector<1x32xf32> to vector<8x32xf32>
    %14 = arith.addf %11, %13 : vector<8x32xf32>
    %15 = arith.addf %14, %0 : vector<8x32xf32>
    %cst_11 = arith.constant 0.000000e+00 : f32
    %16 = vector.broadcast %cst_11 : f32 to vector<8x32xf32>
    %17 = arith.maximumf %15, %16 : vector<8x32xf32>
    %c0_12 = arith.constant 0 : index
    %c0_13 = arith.constant 0 : index
    %18 = vector.load %arg6[%c0_12, %c0_13] : memref<8x32xf32, #tpu.memory_space<vmem>>, vector<8x32xf32>
    tpu.vector_store %arg6[%c0_12, %c0_13], %17 {strides = array<i32>} : memref<8x32xf32, #tpu.memory_space<vmem>>, vector<8x32xf32>,
    return
  }
  func.func @transform_0(%arg0: i32) -> (i32, i32) {
    %c0_i32 = arith.constant 0 : i32
    %c0_i32_0 = arith.constant 0 : i32
    return %arg0, %c0_i32 : i32, i32
  }
  func.func @transform_1(%arg0: i32) -> (i32, i32) {
    %c0_i32 = arith.constant 0 : i32
    %c0_i32_0 = arith.constant 0 : i32
    %c0_i32_1 = arith.constant 0 : i32
    return %c0_i32, %c0_i32_0 : i32, i32
  }
  func.func @transform_2(%arg0: i32) -> (i32, i32) {
    %c0_i32 = arith.constant 0 : i32
    %c0_i32_0 = arith.constant 0 : i32
    %c0_i32_1 = arith.constant 0 : i32
    return %c0_i32, %c0_i32_0 : i32, i32
  }
  func.func @transform_3(%arg0: i32) -> (i32, i32) {
    %c0_i32 = arith.constant 0 : i32
    %c0_i32_0 = arith.constant 0 : i32
    %c0_i32_1 = arith.constant 0 : i32
    return %c0_i32, %c0_i32_0 : i32, i32
  }
  func.func @transform_4(%arg0: i32) -> (i32, i32) {
    %c0_i32 = arith.constant 0 : i32
    %c0_i32_0 = arith.constant 0 : i32
    %c0_i32_1 = arith.constant 0 : i32
    return %c0_i32, %c0_i32_0 : i32, i32
  }
  func.func @transform_5(%arg0: i32) -> (i32, i32) {
    %c0_i32 = arith.constant 0 : i32
    %c0_i32_0 = arith.constant 0 : i32
    return %arg0, %c0_i32 : i32, i32
  }
}

</mosaic_0001>

<bundles_post_ra>
// kernel: tpu_custom_call.1
= control target key start
LH: loop header
LB: loop body
LE: loop exit
PB: predicated region body
PF: predicated region fallthrough
CT: control target
= control target key end

     0   :  { %s318_s0 = inlined_call_operand.vmem [shape: f32[8,32], index: 0, kind: input, shape index: {}]   ;;  %s319_s1 = inlined_call_operand.vmem [shape: bf16[32,128], index: 1, kind: input, shape index: {}]   ;;  %s320_s2 = inlined_call_operand.vmem [shape: f32[1,128], index: 2, kind: input, shape index: {}]   ;;  %s321_s3 = inlined_call_operand.vmem [shape: bf16[128,32], index: 3, kind: input, shape index: {}]   ;;  %s322_s4 = inlined_call_operand.vmem [shape: f32[1,32], index: 4, kind: input, shape index: {}]   ;;  %s323_s5 = inlined_call_operand.hbm [shape: f32[8,32], index: 5, kind: output, shape index: {}]  }
   0x1   :  { %v205_v0 = vld [vmem:[%s319_s1 + $0x8] sm:$0xff]  ;;  %v213_v1 = vld [vmem:[%s321_s3 + $0x38] sm:$0xff]  ;;  %v204_v2 = vld [vmem:[%s319_s1] sm:$0xff] }
   0x2   :  { %54 = vmatpush.bf16.msra.mxu0 %v205_v0  ;;  %v22_v3 = vld [vmem:[%s318_s0] sm:$0xff]  ;;  %131 = vmatpush.bf16.msra.mxu1 %v213_v1  ;;  %v212_v4 = vld [vmem:[%s321_s3 + $0x30] sm:$0xff] }
   0x3   :  { %10 = vsyncpa [#allocation3], 0  ;;  %v23_v5 = vpack.c.bf16 %v22_v3, %v22_v3  ;;  %vm44_vm0 = vcmask 261120   ;;  %v211_v6 = vld [vmem:[%s321_s3 + $0x28] sm:$0xff]  ;;  %v210_v7 = vld [vmem:[%s321_s3 + $0x20] sm:$0xff]  ;;  %s243_s17 = smov [#allocation2]  }
   0x4   :  { %v209_v8 = vld [vmem:[%s321_s3 + $0x18] sm:$0xff]  ;;  %v208_v9 = vld [vmem:[%s321_s3 + $0x10] sm:$0xff]  ;;  %v207_v10 = vld [vmem:[%s321_s3 + $0x8] sm:$0xff]  ;;  %s152_s18 = sshll.u32 %s243_s17, 4  ;;  %s154_s20 = sshll.u32 %s323_s5, 4  ;;  %s153_s18 = int_to_ptr.vmem [resolvable:$true] %s152_s18  ;;  %s155_s20 = int_to_ptr.hbm [resolvable:$true] %s154_s20 }
   0x5   :  { %v206_v11 = vld [vmem:[%s321_s3] sm:$0xff] }
   0x6   :  { %55 = vmatpush.bf16.msra.mxu0 %v204_v2  ;;  %132 = vmatpush.bf16.msra.mxu1 %v212_v4  ;;  %v215_v12 = vld [vmem:[%s320_s2] ss:$0 sm:$0xff] }
   0x7   :  { %v216_v18 = vld [vmem:[%s322_s4] ss:$0 sm:$0xff] }
   0x9   :  { %171 = vmatmul.msk.bf16.vlgmr.msra.gmra.mxu0 %vm44_vm0, %v23_v5 }
   0xa   :  { %133 = vmatpush.bf16.msra.mxu1 %v211_v6 }
   0xe   :  { %134 = vmatpush.bf16.msra.mxu1 %v210_v7 }
  0x12   :  { %135 = vmatpush.bf16.msra.mxu1 %v209_v8 }
  0x16   :  { %136 = vmatpush.bf16.msra.mxu1 %v208_v9 }
  0x1a   :  { %137 = vmatpush.bf16.msra.mxu1 %v207_v10 }
  0x1e   :  { %138 = vmatpush.bf16.msra.mxu1 %v206_v11 }
  0x86   :  { %v57_v13 = vpop.f32.mrf.mxu0 }
  0x87   :  { %v58_v14 = vadd.f32 %v215_v12, %v57_v13 }
  0x89   :  { %v61_v15 = vmax.f32 %v58_v14, 0.0 }
  0x8b   :  { %v62_v16 = vpack.c.bf16 %v61_v15, %v61_v15 }
  0x8d   :  { %139 = vmatmul.bf16.vlgmr.msra.gmra.mxu1 %v62_v16 }
  0x8e   :  { %v59_v17 = vpop.f32.mrf.mxu0 }
 0x10a   :  { %v140_v19 = vpop.f32.mrf.mxu1 }
 0x10b   :  { %v141_v20 = vadd.f32 %v216_v18, %v140_v19 }
 0x10d   :  { %v144_v21 = vadd.f32 %v141_v20, %v22_v3 }
 0x10f   :  { %v145_v22 = vmax.f32 %v144_v21, 0.0 }
 0x111   :  { %146 = vst.msk [vmem:[#allocation2] sm:$0xff] %vm44_vm0, %v145_v22 }
 0x112   :  { %v142_v23 = vpop.f32.mrf.mxu1  ;;  %157 = dma.vmem_to_hbm [thread:$0]  %s153_s18, 128, %s155_s20, [#allocation3]  }
 0x113   :  { %241 = dma.done.wait [#allocation3], 128  }
 0x114   :  { %242 = vsyncadd [#allocation3], 4294967168 }
 0x115   :  { %162 = vsyncpa [#allocation3], 1 }

</bundles_post_ra>
